<compile_context>
chip_gen: v6e
topology: v6e:2x2x1
jax: 0.10.0
libtpu: 0.0.40
codegen_flags: <defaults>
</compile_context>

<pallas_src>
import functools

import jax
import jax.numpy as jnp
from jax.experimental import pallas as pl
from jax.experimental.pallas import tpu as pltpu

_LANES = 128
_SUBLANES = 8
_ROW_ALIGN_ELEMS = _SUBLANES * _LANES          # 1024: slab rows are multiples of 8
_MAX_TILE_ROWS = 4096                          # 4096 x 128 x 4 B = 2 MiB per f32 block
_NUM_SLICES = 2                                # leading "parallel" axis (v7x megacore)
_VMEM_LIMIT_BYTES = 48 * 1024 * 1024           # explicit: v5e default scoped is only 16 MiB
_TINY_ELEMS = _ROW_ALIGN_ELEMS                 # below this, plain XLA (no kernel launch)


def _l1_sum_kernel(*refs, pair_meta):
    """Fused |a-b| partial sums for 1..N pairs of (tile_rows, 128) slabs.

    refs = (a_0, b_0, a_1, b_1, ..., out_ref, acc_0, ..., acc_{n-1}).
    pair_meta[p] = (full_blocks, rem_rows) — static Python ints per pair.
    Grid = (num_slices, blocks_per_slice); inner axis is the reduction.
    """
    n_pairs = len(pair_meta)
    in_refs = refs[: 2 * n_pairs]
    out_ref = refs[2 * n_pairs]
    acc_refs = refs[2 * n_pairs + 1:]

    i = pl.program_id(1)
    blk = pl.program_id(0) * pl.num_programs(1) + i   # global (unclamped) block id

    @pl.when(i == 0)
    def _():
        for acc in acc_refs:
            acc[...] = jnp.zeros_like(acc)

    def _accumulate(acc_ref, a_ref, b_ref, rows):
        # rows is static and a multiple of 8: reduce to an (8,128) vreg-shaped
        # accumulator using only full-vreg VPU adds (no XLU, no masks).
        d = jnp.abs(a_ref[0:rows, :].astype(jnp.float32)
                    - b_ref[0:rows, :].astype(jnp.float32))
        acc_ref[...] += jnp.sum(d.reshape(-1, _SUBLANES, _LANES), axis=0)

    for p, (full_blocks, rem_rows) in enumerate(pair_meta):
        a_ref, b_ref = in_refs[2 * p], in_refs[2 * p + 1]
        acc_ref = acc_refs[p]
        tile_rows = a_ref.shape[0]

        if full_blocks > 0:
            @pl.when(blk < full_blocks)
            def _(a_ref=a_ref, b_ref=b_ref, acc_ref=acc_ref):
                _accumulate(acc_ref, a_ref, b_ref, tile_rows)

        if rem_rows > 0:
            # The single (statically known) partial block: read only the valid
            # rows; out-of-bounds rows in the VMEM block are never touched.
            @pl.when(blk == full_blocks)
            def _(a_ref=a_ref, b_ref=b_ref, acc_ref=acc_ref, rem_rows=rem_rows):
                _accumulate(acc_ref, a_ref, b_ref, rem_rows)

    @pl.when(i == pl.num_programs(1) - 1)
    def _():
        for p in range(n_pairs):
            out_ref[0, p] = acc_refs[p][...]


def _pallas_pairs_l1_sums(pairs):
    """pairs: list of (a_slab, b_slab), equal-shape (rows,128) per pair, rows%8==0, rows>=8.

    Returns an f32 array of shape (n_pairs,) with sum(|a - b|) per pair.
    """
    n_pairs = len(pairs)
    rows_list = [int(a.shape[0]) for a, _ in pairs]
    max_rows = max(rows_list)
    tile_rows = min(_MAX_TILE_ROWS, max_rows)

    processed, pair_meta, last_blks = [], [], []
    for (a, b), rows in zip(pairs, rows_list):
        if rows < tile_rows:
            # Bounded pad (< one tile, <= 2 MiB) only for a pair smaller than a
            # single tile; pad rows contribute |0 - 0| = 0, so no masking needed.
            pad = tile_rows - rows
            a = jnp.pad(a, ((0, pad), (0, 0)))
            b = jnp.pad(b, ((0, pad), (0, 0)))
            rows = tile_rows
        processed.append((a, b))
        pair_meta.append((rows // tile_rows, rows % tile_rows))
        last_blks.append(-(-rows // tile_rows) - 1)

    total_blocks = -(-max_rows // tile_rows)
    num_slices = _NUM_SLICES if total_blocks >= _NUM_SLICES else 1
    blocks_per_slice = -(-total_blocks // num_slices)

    in_specs = []
    for last_blk in last_blks:
        def in_map(c, i, _last=last_blk, _bps=blocks_per_slice):
            # Clamp past-the-end blocks to the pair's own last block; the
            # repeated index avoids a re-DMA and the kernel gates it off.
            return (jnp.minimum(c * _bps + i, _last), 0)
        spec = pl.BlockSpec((tile_rows, _LANES), in_map)
        in_specs += [spec, spec]

    out_spec = pl.BlockSpec((1, n_pairs, _SUBLANES, _LANES),
                            lambda c, i: (c, 0, 0, 0))

    kernel = functools.partial(_l1_sum_kernel, pair_meta=tuple(pair_meta))

    flat_inputs = []
    for a, b in processed:
        flat_inputs += [a, b]

    partial_sums = pl.pallas_call(
        kernel,
        out_shape=jax.ShapeDtypeStruct(
            (num_slices, n_pairs, _SUBLANES, _LANES), jnp.float32),
        grid_spec=pltpu.PrefetchScalarGridSpec(
            num_scalar_prefetch=0,
            grid=(num_slices, blocks_per_slice),
            in_specs=in_specs,
            out_specs=out_spec,
            scratch_shapes=[pltpu.VMEM((_SUBLANES, _LANES), jnp.float32)
                            for _ in range(n_pairs)],
        ),
        compiler_params=pltpu.CompilerParams(
            dimension_semantics=("parallel", "arbitrary"),
            vmem_limit_bytes=_VMEM_LIMIT_BYTES,
        ),
    )(*flat_inputs)

    # Single cross-lane / cross-slice reduce, once, outside the kernel.
    return jnp.sum(partial_sums, axis=(0, 2, 3))


def _split_pair(a, b):
    """Split a pair into (slab_a, slab_b, tail_sum).

    slab_*: (rows, 128) views over the 1024-aligned prefix (rows % 8 == 0), in
    native dtype (no pad of the bulk).  tail_sum: f32 sum|a-b| over the
    remaining < 1024 elements, computed in plain XLA.  slab_* is None when the
    whole pair is below the tiny-input threshold.
    """
    af = a.reshape(-1)
    bf = b.reshape(-1)
    n = af.shape[0]
    aligned = (n // _ROW_ALIGN_ELEMS) * _ROW_ALIGN_ELEMS

    if aligned < n:
        tail_sum = jnp.sum(jnp.abs(af[aligned:].astype(jnp.float32)
                                   - bf[aligned:].astype(jnp.float32)))
    else:
        tail_sum = jnp.float32(0.0)

    if aligned < _TINY_ELEMS:
        return None, None, tail_sum

    pa = af if aligned == n else af[:aligned]
    pb = bf if aligned == n else bf[:aligned]
    return pa.reshape(-1, _LANES), pb.reshape(-1, _LANES), tail_sum


def cycle_l1_sums(z_t_hat, z_t, z_s_restored, z_s):
    """Returns (sum|z_t_hat - z_t|, sum|z_s_restored - z_s|) as f32 scalars."""
    pair_inputs = ((z_t_hat, z_t), (z_s_restored, z_s))
    pair_sums = [None, None]
    tails = [jnp.float32(0.0), jnp.float32(0.0)]
    pallas_pairs, pallas_slots = [], []

    for slot, (a, b) in enumerate(pair_inputs):
        slab_a, slab_b, tail_sum = _split_pair(a, b)
        tails[slot] = tail_sum
        if slab_a is None:
            pair_sums[slot] = tail_sum          # tiny-input fast path (pure XLA)
        else:
            pallas_slots.append(slot)
            pallas_pairs.append((slab_a, slab_b))

    if pallas_pairs:
        sums = _pallas_pairs_l1_sums(pallas_pairs)
        for k, slot in enumerate(pallas_slots):
            pair_sums[slot] = sums[k] + tails[slot]

    return pair_sums[0], pair_sums[1]


class CycleLoss:
    """JAX/Pallas port of the PyTorch CycleLoss module (no parameters)."""

    def __init__(self):
        self.loss_stats_ = dict()

    @property
    def loss_stats(self):
        return self.loss_stats_

    def __call__(self, z_t, z_t_hat, z_s, z_s_restored):
        s_t, s_s = cycle_l1_sums(z_t_hat, z_t, z_s_restored, z_s)
        z_t_l1_loss = s_t / jnp.float32(z_t.size)
        z_s_l1_loss = s_s / jnp.float32(z_s.size)
        loss = z_t_l1_loss + z_s_l1_loss
        # TODO(synk): under jit these stats are tracers (torch stores live
        # tensors); callers should read loss_stats eagerly.
        self.loss_stats_["z_t_l1_loss"] = z_t_l1_loss
        self.loss_stats_["z_s_l1_loss"] = z_s_l1_loss
        self.loss_stats_["total"] = loss
        return loss


if __name__ == "__main__":
    key = jax.random.PRNGKey(0)
    k1, k2, k3, k4 = jax.random.split(key, 4)

    # Small latent tensors, NCHW: batch=2, channels=4, spatial=16x16.
    shape = (2, 4, 16, 16)
    z_t = jax.random.normal(k1, shape, dtype=jnp.float32)
    z_t_hat = jax.random.normal(k2, shape, dtype=jnp.float32)
    z_s = jax.random.normal(k3, shape, dtype=jnp.float32)
    z_s_restored = jax.random.normal(k4, shape, dtype=jnp.float32)

    crit = CycleLoss()
    loss = jax.block_until_ready(crit(z_t, z_t_hat, z_s, z_s_restored))

    ref = jnp.mean(jnp.abs(z_t_hat - z_t)) + jnp.mean(jnp.abs(z_s_restored - z_s))
    assert jnp.allclose(loss, ref, rtol=1e-5, atol=1e-5), (loss, ref)

    # Secondary check: multi-block grid, 2-slice parallel split, statically
    # sliced ragged last block, mismatched pair sizes, bf16 tiny-pair fast path.
    kk = jax.random.split(jax.random.PRNGKey(1), 4)
    big = (8, 8, 92, 100)    # 588800 elems -> 4600 rows -> 2 blocks of 4096
    small = (2, 3, 17, 7)    # 714 elems -> tiny-input XLA path
    a = jax.random.normal(kk[0], big, dtype=jnp.float32)
    b = jax.random.normal(kk[1], big, dtype=jnp.float32)
    c = jax.random.normal(kk[2], small, dtype=jnp.bfloat16)
    d = jax.random.normal(kk[3], small, dtype=jnp.bfloat16)
    loss2 = jax.block_until_ready(CycleLoss()(a, b, c, d))
    ref2 = (jnp.mean(jnp.abs(b - a))
            + jnp.mean(jnp.abs(d.astype(jnp.float32) - c.astype(jnp.float32))))
    assert jnp.allclose(loss2, ref2, rtol=1e-4, atol=1e-4), (loss2, ref2)

    print("KERNEL_OK")
</pallas_src>

<mosaic_0001>
module attributes {stable_mosaic.version = 11 : i64} {
  func.func @_l1_sum_kernel(%arg0: i32, %arg1: i32, %arg2: memref<16x128xf32, #tpu.memory_space<vmem>>, %arg3: memref<16x128xf32, #tpu.memory_space<vmem>>, %arg4: memref<16x128xf32, #tpu.memory_space<vmem>>, %arg5: memref<16x128xf32, #tpu.memory_space<vmem>>, %arg6: memref<1x2x8x128xf32, #tpu.memory_space<vmem>>, %arg7: memref<8x128xf32, #tpu.memory_space<vmem>>, %arg8: memref<8x128xf32, #tpu.memory_space<vmem>>) attributes {dimension_semantics = [#tpu.dimension_semantics<parallel>, #tpu.dimension_semantics<arbitrary>], iteration_bounds = array<i64: 1, 1>, scalar_prefetch = 0 : i64, scratch_operands = 2 : i64, tpu.core_type = #tpu.core_type<tc>, window_params = [{transform_indices = @transform_0, window_bounds = array<i64: 16, 128>}, {transform_indices = @transform_1, window_bounds = array<i64: 16, 128>}, {transform_indices = @transform_2, window_bounds = array<i64: 16, 128>}, {transform_indices = @transform_3, window_bounds = array<i64: 16, 128>}, {transform_indices = @transform_4, window_bounds = array<i64: 1, 2, 8, 128>}]} {
    %c1_i32 = arith.constant 1 : i32
    %0 = arith.muli %arg0, %c1_i32 : i32
    %1 = arith.addi %0, %arg1 : i32
    %c0_i32 = arith.constant 0 : i32
    %2 = arith.cmpi eq, %arg1, %c0_i32 : i32
    %3 = arith.extui %2 : i1 to i32
    %c0_i32_0 = arith.constant 0 : i32
    %4 = arith.cmpi ne, %3, %c0_i32_0 : i32
    scf.if %4 {
      %cst = arith.constant 0.000000e+00 : f32
      %14 = vector.broadcast %cst : f32 to vector<8x128xf32>
      %c0 = arith.constant 0 : index
      %c0_7 = arith.constant 0 : index
      %15 = vector.load %arg7[%c0, %c0_7] : memref<8x128xf32, #tpu.memory_space<vmem>>, vector<8x128xf32>
      tpu.vector_store %arg7[%c0, %c0_7], %14 {strides = array<i32>} : memref<8x128xf32, #tpu.memory_space<vmem>>, vector<8x128xf32>,
      %cst_8 = arith.constant 0.000000e+00 : f32
      %16 = vector.broadcast %cst_8 : f32 to vector<8x128xf32>
      %c0_9 = arith.constant 0 : index
      %c0_10 = arith.constant 0 : index
      %17 = vector.load %arg8[%c0_9, %c0_10] : memref<8x128xf32, #tpu.memory_space<vmem>>, vector<8x128xf32>
      tpu.vector_store %arg8[%c0_9, %c0_10], %16 {strides = array<i32>} : memref<8x128xf32, #tpu.memory_space<vmem>>, vector<8x128xf32>,
    } else {
    }
    %c1_i32_1 = arith.constant 1 : i32
    %5 = arith.cmpi slt, %1, %c1_i32_1 : i32
    %6 = arith.extui %5 : i1 to i32
    %c0_i32_2 = arith.constant 0 : i32
    %7 = arith.cmpi ne, %6, %c0_i32_2 : i32
    scf.if %7 {
      %c0 = arith.constant 0 : index
      %c0_7 = arith.constant 0 : index
      %14 = vector.load %arg2[%c0, %c0_7] : memref<16x128xf32, #tpu.memory_space<vmem>>, vector<16x128xf32>
      %c0_8 = arith.constant 0 : index
      %c0_9 = arith.constant 0 : index
      %15 = vector.load %arg3[%c0_8, %c0_9] : memref<16x128xf32, #tpu.memory_space<vmem>>, vector<16x128xf32>
      %16 = arith.subf %14, %15 : vector<16x128xf32>
      %17 = math.absf %16 : vector<16x128xf32>
      %c0_10 = arith.constant 0 : index
      %c0_11 = arith.constant 0 : index
      %18 = vector.load %arg7[%c0_10, %c0_11] : memref<8x128xf32, #tpu.memory_space<vmem>>, vector<8x128xf32>
      %19 = vector.shape_cast %17 : vector<16x128xf32> to vector<2x8x128xf32>
      %cst = arith.constant dense<0.000000e+00> : vector<8x128xf32>
      %20 = vector.multi_reduction <add>, %19, %cst [0] : vector<2x8x128xf32> to vector<8x128xf32>
      %21 = arith.addf %18, %20 : vector<8x128xf32>
      %c0_12 = arith.constant 0 : index
      %c0_13 = arith.constant 0 : index
      %22 = vector.load %arg7[%c0_12, %c0_13] : memref<8x128xf32, #tpu.memory_space<vmem>>, vector<8x128xf32>
      tpu.vector_store %arg7[%c0_12, %c0_13], %21 {strides = array<i32>} : memref<8x128xf32, #tpu.memory_space<vmem>>, vector<8x128xf32>,
    } else {
    }
    %c1_i32_3 = arith.constant 1 : i32
    %8 = arith.cmpi slt, %1, %c1_i32_3 : i32
    %9 = arith.extui %8 : i1 to i32
    %c0_i32_4 = arith.constant 0 : i32
    %10 = arith.cmpi ne, %9, %c0_i32_4 : i32
    scf.if %10 {
      %c0 = arith.constant 0 : index
      %c0_7 = arith.constant 0 : index
      %14 = vector.load %arg4[%c0, %c0_7] : memref<16x128xf32, #tpu.memory_space<vmem>>, vector<16x128xf32>
      %c0_8 = arith.constant 0 : index
      %c0_9 = arith.constant 0 : index
      %15 = vector.load %arg5[%c0_8, %c0_9] : memref<16x128xf32, #tpu.memory_space<vmem>>, vector<16x128xf32>
      %16 = arith.subf %14, %15 : vector<16x128xf32>
      %17 = math.absf %16 : vector<16x128xf32>
      %c0_10 = arith.constant 0 : index
      %c0_11 = arith.constant 0 : index
      %18 = vector.load %arg8[%c0_10, %c0_11] : memref<8x128xf32, #tpu.memory_space<vmem>>, vector<8x128xf32>
      %19 = vector.shape_cast %17 : vector<16x128xf32> to vector<2x8x128xf32>
      %cst = arith.constant dense<0.000000e+00> : vector<8x128xf32>
      %20 = vector.multi_reduction <add>, %19, %cst [0] : vector<2x8x128xf32> to vector<8x128xf32>
      %21 = arith.addf %18, %20 : vector<8x128xf32>
      %c0_12 = arith.constant 0 : index
      %c0_13 = arith.constant 0 : index
      %22 = vector.load %arg8[%c0_12, %c0_13] : memref<8x128xf32, #tpu.memory_space<vmem>>, vector<8x128xf32>
      tpu.vector_store %arg8[%c0_12, %c0_13], %21 {strides = array<i32>} : memref<8x128xf32, #tpu.memory_space<vmem>>, vector<8x128xf32>,
    } else {
    }
    %c0_i32_5 = arith.constant 0 : i32
    %11 = arith.cmpi eq, %arg1, %c0_i32_5 : i32
    %12 = arith.extui %11 : i1 to i32
    %c0_i32_6 = arith.constant 0 : i32
    %13 = arith.cmpi ne, %12, %c0_i32_6 : i32
    scf.if %13 {
      %c0 = arith.constant 0 : index
      %c0_7 = arith.constant 0 : index
      %14 = vector.load %arg7[%c0, %c0_7] : memref<8x128xf32, #tpu.memory_space<vmem>>, vector<8x128xf32>
      %c0_8 = arith.constant 0 : index
      %c0_9 = arith.constant 0 : index
      %c0_10 = arith.constant 0 : index
      %c0_11 = arith.constant 0 : index
      %15 = vector.load %arg6[%c0_8, %c0_9, %c0_10, %c0_11] : memref<1x2x8x128xf32, #tpu.memory_space<vmem>>, vector<1x1x8x128xf32>
      %16 = vector.shape_cast %15 : vector<1x1x8x128xf32> to vector<8x128xf32>
      %17 = vector.shape_cast %14 : vector<8x128xf32> to vector<1x1x8x128xf32>
      tpu.vector_store %arg6[%c0_8, %c0_9, %c0_10, %c0_11], %17 {strides = array<i32>} : memref<1x2x8x128xf32, #tpu.memory_space<vmem>>, vector<1x1x8x128xf32>,
      %c0_12 = arith.constant 0 : index
      %c0_13 = arith.constant 0 : index
      %18 = vector.load %arg8[%c0_12, %c0_13] : memref<8x128xf32, #tpu.memory_space<vmem>>, vector<8x128xf32>
      %c0_14 = arith.constant 0 : index
      %c1 = arith.constant 1 : index
      %c0_15 = arith.constant 0 : index
      %c0_16 = arith.constant 0 : index
      %19 = vector.load %arg6[%c0_14, %c1, %c0_15, %c0_16] : memref<1x2x8x128xf32, #tpu.memory_space<vmem>>, vector<1x1x8x128xf32>
      %20 = vector.shape_cast %19 : vector<1x1x8x128xf32> to vector<8x128xf32>
      %21 = vector.shape_cast %18 : vector<8x128xf32> to vector<1x1x8x128xf32>
      tpu.vector_store %arg6[%c0_14, %c1, %c0_15, %c0_16], %21 {strides = array<i32>} : memref<1x2x8x128xf32, #tpu.memory_space<vmem>>, vector<1x1x8x128xf32>,
    } else {
    }
    return
  }
  func.func @transform_0(%arg0: i32, %arg1: i32) -> (i32, i32) {
    %c1_i32 = arith.constant 1 : i32
    %0 = arith.muli %arg0, %c1_i32 : i32
    %1 = arith.addi %0, %arg1 : i32
    %c0_i32 = arith.constant 0 : i32
    %2 = arith.minsi %1, %c0_i32 : i32
    %c0_i32_0 = arith.constant 0 : i32
    %c0_i32_1 = arith.constant 0 : i32
    return %2, %c0_i32_0 : i32, i32
  }
  func.func @transform_1(%arg0: i32, %arg1: i32) -> (i32, i32) {
    %c1_i32 = arith.constant 1 : i32
    %0 = arith.muli %arg0, %c1_i32 : i32
    %1 = arith.addi %0, %arg1 : i32
    %c0_i32 = arith.constant 0 : i32
    %2 = arith.minsi %1, %c0_i32 : i32
    %c0_i32_0 = arith.constant 0 : i32
    %c0_i32_1 = arith.constant 0 : i32
    return %2, %c0_i32_0 : i32, i32
  }
  func.func @transform_2(%arg0: i32, %arg1: i32) -> (i32, i32) {
    %c1_i32 = arith.constant 1 : i32
    %0 = arith.muli %arg0, %c1_i32 : i32
    %1 = arith.addi %0, %arg1 : i32
    %c0_i32 = arith.constant 0 : i32
    %2 = arith.minsi %1, %c0_i32 : i32
    %c0_i32_0 = arith.constant 0 : i32
    %c0_i32_1 = arith.constant 0 : i32
    return %2, %c0_i32_0 : i32, i32
  }
  func.func @transform_3(%arg0: i32, %arg1: i32) -> (i32, i32) {
    %c1_i32 = arith.constant 1 : i32
    %0 = arith.muli %arg0, %c1_i32 : i32
    %1 = arith.addi %0, %arg1 : i32
    %c0_i32 = arith.constant 0 : i32
    %2 = arith.minsi %1, %c0_i32 : i32
    %c0_i32_0 = arith.constant 0 : i32
    %c0_i32_1 = arith.constant 0 : i32
    return %2, %c0_i32_0 : i32, i32
  }
  func.func @transform_4(%arg0: i32, %arg1: i32) -> (i32, i32, i32, i32) {
    %c0_i32 = arith.constant 0 : i32
    %c0_i32_0 = arith.constant 0 : i32
    %c0_i32_1 = arith.constant 0 : i32
    %c0_i32_2 = arith.constant 0 : i32
    return %arg0, %c0_i32, %c0_i32_0, %c0_i32_1 : i32, i32, i32, i32
  }
}

</mosaic_0001>

<bundles_post_ra>
// kernel: tpu_custom_call.1
= control target key start
LH: loop header
LB: loop body
LE: loop exit
PB: predicated region body
PF: predicated region fallthrough
CT: control target
= control target key end

     0   :  { %9 = vsyncpa [#allocation5], 0  ;;  %s360_s0 = inlined_call_operand.hbm [shape: f32[16,128], index: 0, kind: input, shape index: {}]   ;;  %s361_s1 = inlined_call_operand.hbm [shape: f32[16,128], index: 1, kind: input, shape index: {}]   ;;  %s362_s2 = inlined_call_operand.hbm [shape: f32[16,128], index: 2, kind: input, shape index: {}]   ;;  %s363_s3 = inlined_call_operand.hbm [shape: f32[16,128], index: 3, kind: input, shape index: {}]   ;;  %s364_s4 = inlined_call_operand.hbm [shape: f32[1,2,8,128], index: 4, kind: output, shape index: {}]  }
   0x1   :  { %10 = vsyncpa [#allocation8], 0 }
   0x2   :  { %11 = vsyncpa [#allocation11], 0 }
   0x3   :  { %12 = vsyncpa [#allocation6], 0  ;;  %s298_s15 = smov [#allocation7]   ;;  %s299_s17 = smov [#allocation4]  }
   0x4   :  { %s42_s16 = sshll.u32 %s298_s15, 4  ;;  %s24_s18 = sshll.u32 %s299_s17, 4  ;;  %s43_s16 = int_to_ptr.vmem [resolvable:$true] %s42_s16  ;;  %s25_s18 = int_to_ptr.vmem [resolvable:$true] %s24_s18 }
   0x5   :  { %s198_s19 = scalar_lea.vmem %s43_s16, 256  ;;  %p203_p1 = scmp.lt.s32.totalorder %s43_s16, %s43_s16 }
   0x6   :  { %p199_p0 = scmp.ne.s32.totalorder %s43_s16, %s198_s19  ;;  %p204_p2 = scmp.lt.s32.totalorder %s198_s19, %s198_s19 }
   0x8   :  { %p205_p3 = por %p204_p2, %p203_p1 }
   0xa   :  { %p206_p4 = pnand %p205_p3, %p199_p0 }
   0xc   :  { %209 = shalt.err (!%p206_p4)
}
   0xd   :  { %s300_s20 = smov 128   ;;  %s301_s21 = smov 8  }
   0xe   :  { %48 = dma.hbm_to_vmem [thread:$0]  %s361_s1, 256, %s43_s16, [#allocation8], %s300_s20, %s300_s20, %s301_s21  }
   0xf   :  { %s218_s24 = scalar_lea.vmem %s25_s18, 256  ;;  %p223_p6 = scmp.lt.s32.totalorder %s25_s18, %s25_s18 }
  0x10   :  { %p219_p5 = scmp.ne.s32.totalorder %s25_s18, %s218_s24  ;;  %p224_p7 = scmp.lt.s32.totalorder %s218_s24, %s218_s24 }
  0x12   :  { %p225_p8 = por %p224_p7, %p223_p6 }
  0x14   :  { %p226_p9 = pnand %p225_p8, %p219_p5 }
  0x16   :  { %229 = shalt.err (!%p226_p9)
}
  0x17   :  { %30 = dma.hbm_to_vmem [thread:$0]  %s360_s0, 256, %s25_s18, [#allocation5], %s300_s20, %s300_s20, %s301_s21  }
  0x18   :  { %s302_s27 = smov [#allocation9]   ;;  %s303_s29 = smov [#allocation10]  }
  0x19   :  { %s60_s28 = sshll.u32 %s302_s27, 4  ;;  %s78_s30 = sshll.u32 %s303_s29, 4  ;;  %s61_s28 = int_to_ptr.vmem [resolvable:$true] %s60_s28  ;;  %s79_s30 = int_to_ptr.vmem [resolvable:$true] %s78_s30 }
  0x1a   :  { %s238_s1 = scalar_lea.vmem %s61_s28, 256  ;;  %p243_p11 = scmp.lt.s32.totalorder %s61_s28, %s61_s28 }
  0x1b   :  { %p239_p10 = scmp.ne.s32.totalorder %s61_s28, %s238_s1  ;;  %p244_p12 = scmp.lt.s32.totalorder %s238_s1, %s238_s1 }
  0x1d   :  { %p245_p13 = por %p244_p12, %p243_p11 }
  0x1f   :  { %p246_p0 = pnand %p245_p13, %p239_p10 }
  0x21   :  { %249 = shalt.err (!%p246_p0)
}
  0x22   :  { %66 = dma.hbm_to_vmem [thread:$0]  %s362_s2, 256, %s61_s28, [#allocation8], %s300_s20, %s300_s20, %s301_s21  }
  0x23   :  { %s258_s0 = scalar_lea.vmem %s79_s30, 256  ;;  %p263_p2 = scmp.lt.s32.totalorder %s79_s30, %s79_s30 }
  0x24   :  { %p259_p1 = scmp.ne.s32.totalorder %s79_s30, %s258_s0  ;;  %p264_p3 = scmp.lt.s32.totalorder %s258_s0, %s258_s0 }
  0x26   :  { %p265_p4 = por %p264_p3, %p263_p2 }
  0x28   :  { %p266_p5 = pnand %p265_p4, %p259_p1 }
  0x2a   :  { %269 = shalt.err (!%p266_p5)
}
  0x2b   :  { %84 = dma.hbm_to_vmem [thread:$0]  %s363_s3, 256, %s79_s30, [#allocation11], %s300_s20, %s300_s20, %s301_s21  }
  0x2c   :  { %290 = dma.done.wait [#allocation5], 256  }
  0x2d   :  { %291 = vsyncadd [#allocation5], 4294967040 }
  0x2e   :  { %292 = dma.done.wait [#allocation8], 512  }
  0x2f   :  { %293 = vsyncadd [#allocation8], 4294966784 }
  0x30   :  { %294 = dma.done.wait [#allocation11], 256  }
  0x31   :  { %295 = vsyncadd [#allocation11], 4294967040  ;;  %v124_v0 = vld [vmem:[#allocation4] sm:$0xff]  ;;  %v125_v1 = vld [vmem:[#allocation4 + $0x8] sm:$0xff]  ;;  %s304_s2 = smov [#allocation12]  }
  0x32   :  { %v126_v2 = vld [vmem:[#allocation7] sm:$0xff]  ;;  %v127_v3 = vld [vmem:[#allocation7 + $0x8] sm:$0xff]  ;;  %v136_v5 = vld [vmem:[#allocation9] sm:$0xff]  ;;  %s161_s3 = sshll.u32 %s304_s2, 4  ;;  %s162_s3 = int_to_ptr.vmem [resolvable:$true] %s161_s3 }
  0x33   :  { %v128_v4 = vsub.f32 %v124_v0, %v126_v2  ;;  %v137_v6 = vld [vmem:[#allocation9 + $0x8] sm:$0xff]  ;;  %v129_v7 = vsub.f32 %v125_v1, %v127_v3  ;;  %v138_v8 = vld [vmem:[#allocation10] sm:$0xff]  ;;  %v139_v9 = vld [vmem:[#allocation10 + $0x8] sm:$0xff]  ;;  %s270_s9 = scalar_lea.vmem %s162_s3, 256  ;;  %p275_p7 = scmp.lt.s32.totalorder %s162_s3, %s162_s3 }
  0x34   :  { %v140_v11 = vsub.f32 %v136_v5, %v138_v8  ;;  %v141_v12 = vsub.f32 %v137_v6, %v139_v9  ;;  %p271_p6 = scmp.ne.s32.totalorder %s162_s3, %s270_s9  ;;  %p276_p8 = scmp.lt.s32.totalorder %s270_s9, %s270_s9 }
  0x35   :  { %v130_v10 = vand.u32 2147483647, %v128_v4  ;;  %v131_v13 = vand.u32 2147483647, %v129_v7 }
  0x36   :  { %v142_v14 = vand.u32 2147483647, %v140_v11  ;;  %v143_v15 = vand.u32 2147483647, %v141_v12  ;;  %p277_p9 = por %p276_p8, %p275_p7 }
  0x37   :  { %v133_v16 = vadd.f32 %v131_v13, %v130_v10 }
  0x38   :  { %v145_v17 = vadd.f32 %v143_v15, %v142_v14  ;;  %p278_p10 = pnand %p277_p9, %p271_p6 }
  0x39   :  { %152 = vst [vmem:[#allocation12] sm:$0xff] %v133_v16 }
  0x3a   :  { %155 = vst [vmem:[#allocation12 + $0x8] sm:$0xff] %v145_v17 }
  0x3b   :  { %281 = shalt.err (!%p278_p10)
}
  0x3c   :  { %167 = dma.vmem_to_hbm [thread:$0]  %s162_s3, 256, %s364_s4, [#allocation6], %s300_s20, %s300_s20, %s301_s21  }
  0x3d   :  { %296 = dma.done.wait [#allocation6], 256  }
  0x3e   :  { %297 = vsyncadd [#allocation6], 4294967040 }
  0x3f   :  { %171 = vsyncpa [#allocation5], 1 }
  0x40   :  { %172 = vsyncpa [#allocation8], 1 }
  0x41   :  { %173 = vsyncpa [#allocation11], 1 }
  0x42   :  { %174 = vsyncpa [#allocation6], 1 }

</bundles_post_ra>
